<compile_context>
chip_gen: v5e
topology: v5e:2x2
jax: 0.10.0
libtpu: 0.0.40
codegen_flags: <defaults>
</compile_context>

<pallas_src>
import functools

import jax
import jax.numpy as jnp
from jax.experimental import pallas as pl
from jax.experimental.pallas import tpu as pltpu

# ---- model hyper-parameters (small, consistent with the module) ------------
BATCH = 2
INPUT_SIZE = 16
HIDDEN_SIZE = 32
NUM_HID_LAYERS = 2
OUTPUT_SIZE = 3

P = 128                                   # padded lane width for all features
NUM_LAYERS = 1 + NUM_HID_LAYERS + 1       # input + hidden + output layers


def _round_up(x, m):
    return (x + m - 1) // m * m


# ---- kernel -----------------------------------------------------------------
def _mlp_kernel(num_layers, x_ref, w_ref, o_ref):
    """Whole MLP on one batch tile.

    x_ref : (TB, P)            activation tile, lane 127 == 1 (bias lane)
    w_ref : (num_layers, P, P) packed weights (bias folded into row 127)
    o_ref : (TB, P)            lane-dense output tile (real output in [:, :3])
    """
    out = x_ref[...]
    # input layer + hidden layers, all followed by ReLU
    for l in range(num_layers - 1):
        out = jnp.maximum(
            jnp.dot(out, w_ref[l], preferred_element_type=jnp.float32), 0.0)
    # output layer, no activation
    o_ref[...] = jnp.dot(out, w_ref[num_layers - 1],
                         preferred_element_type=jnp.float32).astype(o_ref.dtype)


# ---- wrapper ----------------------------------------------------------------
def param_predictor_forward(x, w_slab):
    """x: (batch, INPUT_SIZE) f32. w_slab: (NUM_LAYERS, P, P) packed weights."""
    batch = x.shape[0]
    tb = min(256, _round_up(batch, 8))        # batch tile (multiple of 8)
    batch_pad = _round_up(batch, tb)

    # lane-pad the input and set the constant-1 bias lane
    x_pad = jnp.zeros((batch_pad, P), jnp.float32)
    x_pad = x_pad.at[:batch, :INPUT_SIZE].set(x)
    x_pad = x_pad.at[:, P - 1].set(1.0)

    kernel = functools.partial(_mlp_kernel, NUM_LAYERS)
    out_pad = pl.pallas_call(
        kernel,
        out_shape=jax.ShapeDtypeStruct((batch_pad, P), jnp.float32),
        grid=(batch_pad // tb,),
        in_specs=[
            pl.BlockSpec((tb, P), lambda i: (i, 0)),
            # constant index_map: weight slab fetched once, stays VMEM-resident
            pl.BlockSpec((NUM_LAYERS, P, P), lambda i: (0, 0, 0)),
        ],
        out_specs=pl.BlockSpec((tb, P), lambda i: (i, 0)),
        compiler_params=pltpu.CompilerParams(
            dimension_semantics=("parallel",)),
    )(x_pad, w_slab)

    return out_pad[:batch, :OUTPUT_SIZE]


# ---- parameter init & packing ----------------------------------------------
def init_params(key):
    """Deterministic init mimicking nn.Linear's U(-1/sqrt(fan_in), +1/sqrt(fan_in)).

    Weights stored pre-transposed as (in_features, out_features)."""
    ks = jax.random.split(key, 6)

    def uniform(k, shape, fan_in):
        bound = 1.0 / jnp.sqrt(jnp.float32(fan_in))
        return jax.random.uniform(k, shape, jnp.float32, -bound, bound)

    w_in = uniform(ks[0], (INPUT_SIZE, HIDDEN_SIZE), INPUT_SIZE)
    b_in = uniform(ks[1], (HIDDEN_SIZE,), INPUT_SIZE)
    w_h = uniform(ks[2], (NUM_HID_LAYERS, HIDDEN_SIZE, HIDDEN_SIZE), HIDDEN_SIZE)
    b_h = uniform(ks[3], (NUM_HID_LAYERS, HIDDEN_SIZE), HIDDEN_SIZE)
    w_out = uniform(ks[4], (HIDDEN_SIZE, OUTPUT_SIZE), HIDDEN_SIZE)
    b_out = uniform(ks[5], (OUTPUT_SIZE,), HIDDEN_SIZE)
    return dict(w_in=w_in, b_in=b_in, w_h=w_h, b_h=b_h,
                w_out=w_out, b_out=b_out)


def pack_params(params):
    """Pack all layers into one (NUM_LAYERS, P, P) lane-padded slab.

    Block layout per layer:
      [:in_f, :out_f]  = W (pre-transposed, so y = x @ W)
      [P-1,   :out_f]  = bias (picked up by the constant-1 lane of x)
      [P-1,   P-1]     = 1   (carries the constant-1 lane to the next layer)
    """
    def pack_layer(w_t, b, carry_ones):
        in_f, out_f = w_t.shape
        assert in_f < P and out_f < P, "feature dims must fit below the bias lane"
        blk = jnp.zeros((P, P), jnp.float32)
        blk = blk.at[:in_f, :out_f].set(w_t)
        blk = blk.at[P - 1, :out_f].set(b)
        if carry_ones:
            blk = blk.at[P - 1, P - 1].set(1.0)
        return blk

    blocks = [pack_layer(params["w_in"], params["b_in"], True)]
    for l in range(NUM_HID_LAYERS):
        blocks.append(pack_layer(params["w_h"][l], params["b_h"][l], True))
    blocks.append(pack_layer(params["w_out"], params["b_out"], False))
    return jnp.stack(blocks)                      # (NUM_LAYERS, P, P)


# ---- pure-JAX reference (matches the PyTorch forward) ------------------------
def reference_forward(x, params):
    out = jnp.maximum(x @ params["w_in"] + params["b_in"], 0.0)
    for l in range(NUM_HID_LAYERS):
        out = jnp.maximum(out @ params["w_h"][l] + params["b_h"][l], 0.0)
    return out @ params["w_out"] + params["b_out"]


if __name__ == "__main__":
    key = jax.random.PRNGKey(0)
    k_x, k_p = jax.random.split(key)
    x = jax.random.normal(k_x, (BATCH, INPUT_SIZE), jnp.float32)
    params = init_params(k_p)
    w_slab = pack_params(params)

    out = param_predictor_forward(x, w_slab)
    out = jax.block_until_ready(out)

    ref = reference_forward(x, params)
    assert out.shape == (BATCH, OUTPUT_SIZE), out.shape
    assert jnp.allclose(out, ref, atol=1e-5, rtol=1e-5), (out, ref)
    print("KERNEL_OK")
</pallas_src>

<mosaic_0001>
module attributes {stable_mosaic.version = 11 : i64} {
  func.func @_mlp_kernel(%arg0: i32, %arg1: memref<8x128xf32, #tpu.memory_space<vmem>>, %arg2: memref<4x128x128xf32, #tpu.memory_space<vmem>>, %arg3: memref<8x128xf32, #tpu.memory_space<vmem>>) attributes {dimension_semantics = [#tpu.dimension_semantics<parallel>], iteration_bounds = array<i64: 1>, scalar_prefetch = 0 : i64, scratch_operands = 0 : i64, tpu.core_type = #tpu.core_type<tc>, window_params = [{transform_indices = @transform_0, window_bounds = array<i64: 8, 128>}, {pipeline_mode = #tpu.pipeline_mode<synchronous>, transform_indices = @transform_1, window_bounds = array<i64: 4, 128, 128>}, {transform_indices = @transform_2, window_bounds = array<i64: 8, 128>}]} {
    %c0 = arith.constant 0 : index
    %c0_0 = arith.constant 0 : index
    %0 = vector.load %arg1[%c0, %c0_0] : memref<8x128xf32, #tpu.memory_space<vmem>>, vector<8x128xf32>
    %c0_1 = arith.constant 0 : index
    %c0_2 = arith.constant 0 : index
    %c0_3 = arith.constant 0 : index
    %1 = vector.load %arg2[%c0_1, %c0_2, %c0_3] : memref<4x128x128xf32, #tpu.memory_space<vmem>>, vector<1x128x128xf32>
    %2 = vector.shape_cast %1 : vector<1x128x128xf32> to vector<128x128xf32>
    %cst = arith.constant dense<0.000000e+00> : vector<8x128xf32>
    %3 = tpu.matmul %0, %2, %cst {dimension_numbers = #tpu.dot_dimension_numbers<[1], [0], [0], [1], [0, 0, 1, 1], [], []>} : vector<8x128xf32>, vector<128x128xf32>, vector<8x128xf32> -> vector<8x128xf32>
    %cst_4 = arith.constant 0.000000e+00 : f32
    %4 = vector.broadcast %cst_4 : f32 to vector<8x128xf32>
    %5 = arith.maximumf %3, %4 : vector<8x128xf32>
    %c1 = arith.constant 1 : index
    %c0_5 = arith.constant 0 : index
    %c0_6 = arith.constant 0 : index
    %6 = vector.load %arg2[%c1, %c0_5, %c0_6] : memref<4x128x128xf32, #tpu.memory_space<vmem>>, vector<1x128x128xf32>
    %7 = vector.shape_cast %6 : vector<1x128x128xf32> to vector<128x128xf32>
    %cst_7 = arith.constant dense<0.000000e+00> : vector<8x128xf32>
    %8 = tpu.matmul %5, %7, %cst_7 {dimension_numbers = #tpu.dot_dimension_numbers<[1], [0], [0], [1], [0, 0, 1, 1], [], []>} : vector<8x128xf32>, vector<128x128xf32>, vector<8x128xf32> -> vector<8x128xf32>
    %cst_8 = arith.constant 0.000000e+00 : f32
    %9 = vector.broadcast %cst_8 : f32 to vector<8x128xf32>
    %10 = arith.maximumf %8, %9 : vector<8x128xf32>
    %c2 = arith.constant 2 : index
    %c0_9 = arith.constant 0 : index
    %c0_10 = arith.constant 0 : index
    %11 = vector.load %arg2[%c2, %c0_9, %c0_10] : memref<4x128x128xf32, #tpu.memory_space<vmem>>, vector<1x128x128xf32>
    %12 = vector.shape_cast %11 : vector<1x128x128xf32> to vector<128x128xf32>
    %cst_11 = arith.constant dense<0.000000e+00> : vector<8x128xf32>
    %13 = tpu.matmul %10, %12, %cst_11 {dimension_numbers = #tpu.dot_dimension_numbers<[1], [0], [0], [1], [0, 0, 1, 1], [], []>} : vector<8x128xf32>, vector<128x128xf32>, vector<8x128xf32> -> vector<8x128xf32>
    %cst_12 = arith.constant 0.000000e+00 : f32
    %14 = vector.broadcast %cst_12 : f32 to vector<8x128xf32>
    %15 = arith.maximumf %13, %14 : vector<8x128xf32>
    %c3 = arith.constant 3 : index
    %c0_13 = arith.constant 0 : index
    %c0_14 = arith.constant 0 : index
    %16 = vector.load %arg2[%c3, %c0_13, %c0_14] : memref<4x128x128xf32, #tpu.memory_space<vmem>>, vector<1x128x128xf32>
    %17 = vector.shape_cast %16 : vector<1x128x128xf32> to vector<128x128xf32>
    %cst_15 = arith.constant dense<0.000000e+00> : vector<8x128xf32>
    %18 = tpu.matmul %15, %17, %cst_15 {dimension_numbers = #tpu.dot_dimension_numbers<[1], [0], [0], [1], [0, 0, 1, 1], [], []>} : vector<8x128xf32>, vector<128x128xf32>, vector<8x128xf32> -> vector<8x128xf32>
    %c0_16 = arith.constant 0 : index
    %c0_17 = arith.constant 0 : index
    %19 = vector.load %arg3[%c0_16, %c0_17] : memref<8x128xf32, #tpu.memory_space<vmem>>, vector<8x128xf32>
    tpu.vector_store %arg3[%c0_16, %c0_17], %18 {strides = array<i32>} : memref<8x128xf32, #tpu.memory_space<vmem>>, vector<8x128xf32>,
    return
  }
  func.func @transform_0(%arg0: i32) -> (i32, i32) {
    %c0_i32 = arith.constant 0 : i32
    %c0_i32_0 = arith.constant 0 : i32
    return %arg0, %c0_i32 : i32, i32
  }
  func.func @transform_1(%arg0: i32) -> (i32, i32, i32) {
    %c0_i32 = arith.constant 0 : i32
    %c0_i32_0 = arith.constant 0 : i32
    %c0_i32_1 = arith.constant 0 : i32
    %c0_i32_2 = arith.constant 0 : i32
    return %c0_i32, %c0_i32_0, %c0_i32_1 : i32, i32, i32
  }
  func.func @transform_2(%arg0: i32) -> (i32, i32) {
    %c0_i32 = arith.constant 0 : i32
    %c0_i32_0 = arith.constant 0 : i32
    return %arg0, %c0_i32 : i32, i32
  }
}

</mosaic_0001>

<bundles_post_ra>
// kernel: tpu_custom_call.1
= control target key start
LH: loop header
LB: loop body
LE: loop exit
PB: predicated region body
PF: predicated region fallthrough
CT: control target
= control target key end

     0   :  { %7 = vsyncpa [#allocation3], 0  ;;  %s324_s0 = inlined_call_operand.hbm [shape: f32[8,128], index: 0, kind: input, shape index: {}]   ;;  %s325_s1 = inlined_call_operand.hbm [shape: f32[4,128,128], index: 1, kind: input, shape index: {}]   ;;  %s326_s2 = inlined_call_operand.hbm [shape: f32[8,128], index: 2, kind: output, shape index: {}]  }
   0x1   :  { %8 = vsyncpa [#allocation6], 0 }
   0x2   :  { %9 = vsyncpa [#allocation4], 0  ;;  %s15_s11 = sshll.u32 %s324_s0, 4  ;;  %s295_s12 = smov [#allocation2]   ;;  %s16_s11 = int_to_ptr.hbm [resolvable:$true] %s15_s11 }
   0x3   :  { %s17_s13 = sshll.u32 %s295_s12, 4  ;;  %s25_s16 = sshll.u32 %s325_s1, 4  ;;  %s18_s13 = int_to_ptr.vmem [resolvable:$true] %s17_s13  ;;  %s26_s16 = int_to_ptr.hbm [resolvable:$true] %s25_s16 }
   0x4   :  { %20 = dma.hbm_to_vmem [thread:$0]  %s16_s11, 128, %s18_s13, [#allocation3]  }
   0x5   :  { %s296_s17 = smov [#allocation5]   ;;  %s297_s19 = smov 128  }
   0x6   :  { %s27_s18 = sshll.u32 %s296_s17, 4  ;;  %s298_s20 = smov 8   ;;  %s28_s18 = int_to_ptr.vmem [resolvable:$true] %s27_s18 }
   0x7   :  { %33 = dma.hbm_to_vmem [thread:$0]  %s26_s16, 8192, %s28_s18, [#allocation6], %s297_s19, %s297_s19, %s298_s20  }
   0x8   :  { %289 = dma.done.wait [#allocation3], 128  }
   0x9   :  { %290 = vsyncadd [#allocation3], 4294967168 }
   0xa   :  { %291 = dma.done.wait [#allocation6], 8192  }
   0xb   :  { %292 = vsyncadd [#allocation6], 4294959104  ;;  %v58_v0 = vld [vmem:[#allocation5 + $0x78] sm:$0xff]  ;;  %v57_v1 = vld [vmem:[#allocation5 + $0x70] sm:$0xff]  ;;  %s299_s0 = smov [#allocation7]   ;;  %s201_s23 = sshll.u32 %s326_s2, 4  ;;  %s202_s23 = int_to_ptr.hbm [resolvable:$true] %s201_s23 }
   0xc   :  { %59 = vmatpush.msra.mxu0 %v58_v0  ;;  %v56_v2 = vld [vmem:[#allocation5 + $0x68] sm:$0xff]  ;;  %v55_v3 = vld [vmem:[#allocation5 + $0x60] sm:$0xff]  ;;  %v96_v4 = vld [vmem:[#allocation5 + $0xf8] sm:$0xff]  ;;  %s199_s1 = sshll.u32 %s299_s0, 4  ;;  %s200_s1 = int_to_ptr.vmem [resolvable:$true] %s199_s1 }
   0xd   :  { %v54_v5 = vld [vmem:[#allocation5 + $0x58] sm:$0xff]  ;;  %97 = vmatpush.msra.mxu1 %v96_v4  ;;  %v95_v6 = vld [vmem:[#allocation5 + $0xf0] sm:$0xff]  ;;  %v94_v7 = vld [vmem:[#allocation5 + $0xe8] sm:$0xff] }
   0xe   :  { %60 = vmatpush.msra.mxu0 %v57_v1  ;;  %v53_v8 = vld [vmem:[#allocation5 + $0x50] sm:$0xff]  ;;  %v93_v9 = vld [vmem:[#allocation5 + $0xe0] sm:$0xff]  ;;  %v52_v10 = vld [vmem:[#allocation5 + $0x48] sm:$0xff] }
   0xf   :  { %98 = vmatpush.msra.mxu1 %v95_v6  ;;  %v92_v11 = vld [vmem:[#allocation5 + $0xd8] sm:$0xff]  ;;  %v51_v12 = vld [vmem:[#allocation5 + $0x40] sm:$0xff]  ;;  %v91_v13 = vld [vmem:[#allocation5 + $0xd0] sm:$0xff] }
  0x10   :  { %61 = vmatpush.msra.mxu0 %v56_v2  ;;  %v50_v14 = vld [vmem:[#allocation5 + $0x38] sm:$0xff]  ;;  %v90_v15 = vld [vmem:[#allocation5 + $0xc8] sm:$0xff]  ;;  %v49_v16 = vld [vmem:[#allocation5 + $0x30] sm:$0xff] }
  0x11   :  { %99 = vmatpush.msra.mxu1 %v94_v7  ;;  %v89_v17 = vld [vmem:[#allocation5 + $0xc0] sm:$0xff]  ;;  %v48_v18 = vld [vmem:[#allocation5 + $0x28] sm:$0xff]  ;;  %v88_v19 = vld [vmem:[#allocation5 + $0xb8] sm:$0xff] }
  0x12   :  { %62 = vmatpush.msra.mxu0 %v55_v3  ;;  %v47_v20 = vld [vmem:[#allocation5 + $0x20] sm:$0xff]  ;;  %v87_v21 = vld [vmem:[#allocation5 + $0xb0] sm:$0xff]  ;;  %v46_v22 = vld [vmem:[#allocation5 + $0x18] sm:$0xff] }
  0x13   :  { %100 = vmatpush.msra.mxu1 %v93_v9  ;;  %v86_v23 = vld [vmem:[#allocation5 + $0xa8] sm:$0xff]  ;;  %v45_v24 = vld [vmem:[#allocation5 + $0x10] sm:$0xff]  ;;  %v85_v25 = vld [vmem:[#allocation5 + $0xa0] sm:$0xff] }
  0x14   :  { %63 = vmatpush.msra.mxu0 %v54_v5  ;;  %v44_v26 = vld [vmem:[#allocation5 + $0x8] sm:$0xff]  ;;  %v84_v27 = vld [vmem:[#allocation5 + $0x98] sm:$0xff]  ;;  %v43_v28 = vld [vmem:[#allocation5] sm:$0xff] }
  0x15   :  { %101 = vmatpush.msra.mxu1 %v92_v11  ;;  %v42_v29 = vld [vmem:[#allocation2] sm:$0xff]  ;;  %v83_v30 = vld [vmem:[#allocation5 + $0x90] sm:$0xff]  ;;  %v82_v31 = vld [vmem:[#allocation5 + $0x88] sm:$0xff] }
  0x16   :  { %64 = vmatpush.msra.mxu0 %v53_v8  ;;  %v81_v32 = vld [vmem:[#allocation5 + $0x80] sm:$0xff]  ;;  %v134_v33 = vld [vmem:[#allocation5 + $0x178] sm:$0xff]  ;;  %v133_v34 = vld [vmem:[#allocation5 + $0x170] sm:$0xff] }
  0x17   :  { %102 = vmatpush.msra.mxu1 %v91_v13  ;;  %135 = vmatpush.msra.mxu2 %v134_v33  ;;  %v132_v35 = vld [vmem:[#allocation5 + $0x168] sm:$0xff]  ;;  %v131_v36 = vld [vmem:[#allocation5 + $0x160] sm:$0xff]  ;;  %v130_v37 = vld [vmem:[#allocation5 + $0x158] sm:$0xff] }
  0x18   :  { %65 = vmatpush.msra.mxu0 %v52_v10  ;;  %v129_v38 = vld [vmem:[#allocation5 + $0x150] sm:$0xff]  ;;  %v128_v39 = vld [vmem:[#allocation5 + $0x148] sm:$0xff]  ;;  %v127_v40 = vld [vmem:[#allocation5 + $0x140] sm:$0xff] }
  0x19   :  { %103 = vmatpush.msra.mxu1 %v90_v15  ;;  %136 = vmatpush.msra.mxu2 %v133_v34  ;;  %v126_v41 = vld [vmem:[#allocation5 + $0x138] sm:$0xff]  ;;  %v125_v42 = vld [vmem:[#allocation5 + $0x130] sm:$0xff]  ;;  %v124_v43 = vld [vmem:[#allocation5 + $0x128] sm:$0xff] }
  0x1a   :  { %66 = vmatpush.msra.mxu0 %v51_v12  ;;  %v123_v44 = vld [vmem:[#allocation5 + $0x120] sm:$0xff]  ;;  %v122_v45 = vld [vmem:[#allocation5 + $0x118] sm:$0xff]  ;;  %v121_v46 = vld [vmem:[#allocation5 + $0x110] sm:$0xff] }
  0x1b   :  { %104 = vmatpush.msra.mxu1 %v89_v17  ;;  %137 = vmatpush.msra.mxu2 %v132_v35  ;;  %v120_v49 = vld [vmem:[#allocation5 + $0x108] sm:$0xff]  ;;  %v119_v50 = vld [vmem:[#allocation5 + $0x100] sm:$0xff]  ;;  %v172_v51 = vld [vmem:[#allocation5 + $0x1f8] sm:$0xff] }
  0x1c   :  { %67 = vmatpush.msra.mxu0 %v50_v14  ;;  %v171_v52 = vld [vmem:[#allocation5 + $0x1f0] sm:$0xff]  ;;  %173 = vmatpush.msra.mxu3 %v172_v51  ;;  %v170_v53 = vld [vmem:[#allocation5 + $0x1e8] sm:$0xff]  ;;  %v169_v54 = vld [vmem:[#allocation5 + $0x1e0] sm:$0xff] }
  0x1d   :  { %105 = vmatpush.msra.mxu1 %v88_v19  ;;  %138 = vmatpush.msra.mxu2 %v131_v36  ;;  %v168_v55 = vld [vmem:[#allocation5 + $0x1d8] sm:$0xff]  ;;  %v167_v56 = vld [vmem:[#allocation5 + $0x1d0] sm:$0xff]  ;;  %v166_v57 = vld [vmem:[#allocation5 + $0x1c8] sm:$0xff] }
  0x1e   :  { %68 = vmatpush.msra.mxu0 %v49_v16  ;;  %174 = vmatpush.msra.mxu3 %v171_v52  ;;  %v165_v58 = vld [vmem:[#allocation5 + $0x1c0] sm:$0xff]  ;;  %v164_v59 = vld [vmem:[#allocation5 + $0x1b8] sm:$0xff]  ;;  %v163_v60 = vld [vmem:[#allocation5 + $0x1b0] sm:$0xff] }
  0x1f   :  { %106 = vmatpush.msra.mxu1 %v87_v21  ;;  %139 = vmatpush.msra.mxu2 %v130_v37  ;;  %v162_v61 = vld [vmem:[#allocation5 + $0x1a8] sm:$0xff]  ;;  %v161_v62 = vld [vmem:[#allocation5 + $0x1a0] sm:$0xff]  ;;  %v160_v63 = vld [vmem:[#allocation5 + $0x198] sm:$0xff] }
  0x20   :  { %69 = vmatpush.msra.mxu0 %v48_v18  ;;  %175 = vmatpush.msra.mxu3 %v170_v53  ;;  %v159_v0 = vld [vmem:[#allocation5 + $0x190] sm:$0xff]  ;;  %v158_v3 = vld [vmem:[#allocation5 + $0x188] sm:$0xff]  ;;  %v157_v4 = vld [vmem:[#allocation5 + $0x180] sm:$0xff] }
  0x21   :  { %107 = vmatpush.msra.mxu1 %v86_v23  ;;  %140 = vmatpush.msra.mxu2 %v129_v38 }
  0x22   :  { %70 = vmatpush.msra.mxu0 %v47_v20  ;;  %176 = vmatpush.msra.mxu3 %v169_v54 }
  0x23   :  { %108 = vmatpush.msra.mxu1 %v85_v25  ;;  %141 = vmatpush.msra.mxu2 %v128_v39 }
  0x24   :  { %71 = vmatpush.msra.mxu0 %v46_v22  ;;  %177 = vmatpush.msra.mxu3 %v168_v55 }
  0x25   :  { %109 = vmatpush.msra.mxu1 %v84_v27  ;;  %142 = vmatpush.msra.mxu2 %v127_v40 }
  0x26   :  { %72 = vmatpush.msra.mxu0 %v45_v24  ;;  %178 = vmatpush.msra.mxu3 %v167_v56 }
  0x27   :  { %110 = vmatpush.msra.mxu1 %v83_v30  ;;  %143 = vmatpush.msra.mxu2 %v126_v41 }
  0x28   :  { %73 = vmatpush.msra.mxu0 %v44_v26  ;;  %179 = vmatpush.msra.mxu3 %v166_v57 }
  0x29   :  { %111 = vmatpush.msra.mxu1 %v82_v31  ;;  %144 = vmatpush.msra.mxu2 %v125_v42 }
  0x2a   :  { %74 = vmatpush.msra.mxu0 %v43_v28  ;;  %180 = vmatpush.msra.mxu3 %v165_v58 }
  0x2b   :  { %75 = vmatmul.f32.vlgmr.msra.gmra.mxu0 %v42_v29  ;;  %112 = vmatpush.msra.mxu1 %v81_v32 }
  0x2c   :  { %145 = vmatpush.msra.mxu2 %v124_v43  ;;  %181 = vmatpush.msra.mxu3 %v164_v59 }
  0x2e   :  { %146 = vmatpush.msra.mxu2 %v123_v44  ;;  %182 = vmatpush.msra.mxu3 %v163_v60 }
  0x30   :  { %147 = vmatpush.msra.mxu2 %v122_v45  ;;  %183 = vmatpush.msra.mxu3 %v162_v61 }
  0x32   :  { %148 = vmatpush.msra.mxu2 %v121_v46  ;;  %184 = vmatpush.msra.mxu3 %v161_v62 }
  0x34   :  { %149 = vmatpush.msra.mxu2 %v120_v49  ;;  %185 = vmatpush.msra.mxu3 %v160_v63 }
  0x36   :  { %150 = vmatpush.msra.mxu2 %v119_v50  ;;  %186 = vmatpush.msra.mxu3 %v159_v0 }
  0x38   :  { %187 = vmatpush.msra.mxu3 %v158_v3 }
  0x3a   :  { %188 = vmatpush.msra.mxu3 %v157_v4 }
  0xa8   :  { %v76_v47 = vpop.f32.mrf.mxu0 }
  0xa9   :  { %v79_v48 = vmax.f32 %v76_v47, 0.0 }
  0xab   :  { %113 = vmatmul.f32.vlgmr.msra.gmra.mxu1 %v79_v48 }
 0x128   :  { %v114_v1 = vpop.f32.mrf.mxu1 }
 0x129   :  { %v117_v2 = vmax.f32 %v114_v1, 0.0 }
 0x12b   :  { %151 = vmatmul.f32.vlgmr.msra.gmra.mxu2 %v117_v2 }
 0x1ae   :  { %v152_v5 = vpop.f32.mrf.mxu2 }
 0x1af   :  { %v155_v6 = vmax.f32 %v152_v5, 0.0 }
 0x1b1   :  { %189 = vmatmul.f32.vlgmr.msra.gmra.mxu3 %v155_v6 }
 0x234   :  { %v190_v7 = vpop.f32.mrf.mxu3 }
 0x235   :  { %193 = vst [vmem:[#allocation7] sm:$0xff] %v190_v7 }
 0x236   :  { %204 = dma.vmem_to_hbm [thread:$0]  %s200_s1, 128, %s202_s23, [#allocation4]  }
 0x237   :  { %293 = dma.done.wait [#allocation4], 128  }
 0x238   :  { %294 = vsyncadd [#allocation4], 4294967168 }
 0x239   :  { %209 = vsyncpa [#allocation3], 1 }
 0x23a   :  { %210 = vsyncpa [#allocation6], 1 }
 0x23b   :  { %211 = vsyncpa [#allocation4], 1 }

</bundles_post_ra>
